<compile_context>
chip_gen: v7x
topology: tpu7x:2x2x1
jax: 0.10.0
libtpu: 0.0.40
codegen_flags: <defaults>
</compile_context>

<pallas_src>
import functools

import jax
import jax.numpy as jnp
from jax.experimental import pallas as pl
from jax.experimental.pallas import tpu as pltpu


def _round_up(x, m):
    return (x + m - 1) // m * m


def _cdiv(a, b):
    return -(-a // b)


# ------------------------------ kernel helpers --------------------------------
def _stable_sigmoid(z):
    # Overflow-free sigmoid using only exp (EUP) + select/div (VPU).
    ez = jnp.exp(-jnp.abs(z))
    return jnp.where(z >= 0, 1.0 / (1.0 + ez), ez / (1.0 + ez))


def _se_scale_from_pooled(pooled_cols, wd, bd, wu, bu):
    """pooled_cols: (C8, 8) identical columns -> (C8, 1) sigmoid scale (f32)."""
    h = jnp.dot(wd, pooled_cols, preferred_element_type=jnp.float32) + bd   # (I8, 8)
    h = jnp.maximum(h, 0.0)
    z = jnp.dot(wu, h, preferred_element_type=jnp.float32) + bu             # (C8, 8)
    return _stable_sigmoid(z[:, 0:1])                                       # (C8, 1)


# -------- single-pass fused kernel (whole (C, HW) slab resident in VMEM) ------
def _se_fused_kernel(x_ref, wd_ref, bd_ref, wu_ref, bu_ref, o_ref,
                     pool_sc, scale_sc, *, inv_hw, c):
    xs = x_ref[0]                                                  # (C, HW), native dtype
    # f32-accumulated global mean over the spatial (lane) axis; no f32 slab copy.
    pooled = jnp.sum(xs.astype(jnp.float32), axis=-1, keepdims=True) * inv_hw  # (C, 1)
    # Pad the pooled vector up to the (C8, 8) working shape through a tiny scratch.
    pool_sc[...] = jnp.zeros_like(pool_sc)                         # (C8, 8)
    pool_sc[0:c, :] = jnp.broadcast_to(pooled, (c, 8))
    scale_sc[...] = _se_scale_from_pooled(
        pool_sc[...], wd_ref[...], bd_ref[...], wu_ref[...], bu_ref[...])  # (C8, 1)
    s = scale_sc[0:c, :].astype(xs.dtype)                          # (C, 1)
    # Broadcast multiply in the input dtype (no full-tile upcast).
    o_ref[0] = (xs * s).astype(o_ref.dtype)


# -------- two-pass tiled path: pass 1 (pool + FC -> per-(N,C) scale) ----------
def _se_scale_kernel(x_ref, wd_ref, bd_ref, wu_ref, bu_ref, s_ref,
                     acc_sc, scale_sc, *, inv_hw, c, hw, thw):
    t = pl.program_id(1)

    @pl.when(t == 0)
    def _():
        acc_sc[...] = jnp.zeros_like(acc_sc)

    xt = x_ref[0]                                                  # (C, THW)
    if hw % thw != 0:
        # Ragged spatial tail: lanes past the array extent of the edge tile hold
        # garbage (Pallas only DMAs the valid window) -> mask them to zero.
        lane = jax.lax.broadcasted_iota(jnp.int32, (c, thw), 1)
        xt = jnp.where(lane < (hw - t * thw), xt, jnp.zeros_like(xt))
    part = jnp.sum(xt.astype(jnp.float32), axis=-1, keepdims=True)  # (C, 1) f32
    acc_sc[0:c, :] += jnp.broadcast_to(part, (c, 8))

    @pl.when(t == pl.num_programs(1) - 1)
    def _():
        scale_sc[...] = _se_scale_from_pooled(
            acc_sc[...] * inv_hw, wd_ref[...], bd_ref[...], wu_ref[...], bu_ref[...])
        s_ref[0] = scale_sc[0:c, :]


# -------- two-pass tiled path: pass 2 (broadcast multiply, native dtype) ------
def _se_apply_kernel(x_ref, s_ref, o_ref):
    xt = x_ref[0]                                                  # (C, THW)
    o_ref[0] = (xt * s_ref[0].astype(xt.dtype)).astype(o_ref.dtype)


# ---------------------------------- wrapper -----------------------------------
def _vmem_limit_bytes_default():
    try:
        cap = int(pltpu.get_tpu_info().vmem_capacity_bytes)
    except Exception:
        cap = 64 << 20            # conservative: v7x has 64 MiB per TensorCore
    # ~25% headroom for the compiler; never request more than 100 MiB.
    return int(min(cap * 3 // 4, 100 << 20))


def _spatial_tiling(hw, c_rows, elt_bytes, tile_budget_bytes):
    """Lane (spatial) tile size: a multiple of 128, as large as the budget allows."""
    hw128 = _round_up(hw, 128)
    max_lanes = (tile_budget_bytes // max(1, elt_bytes * c_rows)) // 128 * 128
    max_lanes = max(128, max_lanes)
    thw = min(hw128, max_lanes)
    n_t = _cdiv(hw, thw)
    thw = _round_up(_cdiv(hw, n_t), 128)    # balance tile sizes
    n_t = _cdiv(hw, thw)
    return thw, n_t


@functools.partial(
    jax.jit,
    static_argnames=("force_two_pass", "tile_budget_bytes", "vmem_limit_bytes"))
def se_block_forward(x_nchw, down_w, down_b, up_w, up_b, *,
                     force_two_pass=False, tile_budget_bytes=None,
                     vmem_limit_bytes=None):
    n, c, h, w = x_nchw.shape
    internal = down_w.shape[0]
    hw = h * w
    c8 = _round_up(c, 8)
    i8 = _round_up(internal, 8)

    # Tiny 1x1-conv weights, zero-padded to sublane multiples.  Exact: padded
    # rows/columns carry zero weight & bias, so they never affect the result.
    wd = jnp.pad(down_w.astype(jnp.float32), ((0, i8 - internal), (0, c8 - c)))  # (I8, C8)
    bd = jnp.pad(down_b.astype(jnp.float32), (0, i8 - internal)).reshape(i8, 1)
    wu = jnp.pad(up_w.astype(jnp.float32), ((0, c8 - c), (0, i8 - internal)))    # (C8, I8)
    bu = jnp.pad(up_b.astype(jnp.float32), (0, c8 - c)).reshape(c8, 1)

    inv_hw = 1.0 / hw
    elt = jnp.dtype(x_nchw.dtype).itemsize
    x = x_nchw.reshape(n, c, hw)            # contiguous -> free under jit

    if vmem_limit_bytes is None:
        vmem_limit_bytes = _vmem_limit_bytes_default()

    # Fused path budget: input + output slabs are each double-buffered (4x slab),
    # plus double-buffered weights; extra headroom for narrow dtypes' f32 reduce.
    weight_vmem = 2 * 4 * (i8 * c8 + i8 + c8 * i8 + c8)
    slab_bytes = c8 * _round_up(hw, 128) * elt      # layout-padded per-buffer size
    divisor = 4 if elt >= 4 else 6
    fused_budget = max(1 << 20, (vmem_limit_bytes - weight_vmem - (2 << 20)) // divisor)
    fused_ok = (not force_two_pass) and (slab_bytes <= fused_budget)

    if fused_ok:
        # Single pass: x is read from HBM exactly once and written exactly once.
        y = pl.pallas_call(
            functools.partial(_se_fused_kernel, inv_hw=inv_hw, c=c),
            out_shape=jax.ShapeDtypeStruct((n, c, hw), x.dtype),
            grid=(n,),
            in_specs=[
                pl.BlockSpec((1, c, hw), lambda b: (b, 0, 0)),
                pl.BlockSpec((i8, c8), lambda b: (0, 0)),
                pl.BlockSpec((i8, 1), lambda b: (0, 0)),
                pl.BlockSpec((c8, i8), lambda b: (0, 0)),
                pl.BlockSpec((c8, 1), lambda b: (0, 0)),
            ],
            out_specs=pl.BlockSpec((1, c, hw), lambda b: (b, 0, 0)),
            scratch_shapes=[pltpu.VMEM((c8, 8), jnp.float32),
                            pltpu.VMEM((c8, 1), jnp.float32)],
            compiler_params=pltpu.CompilerParams(
                dimension_semantics=("parallel",),
                vmem_limit_bytes=int(vmem_limit_bytes)),
        )(x, wd, bd, wu, bu)
        return y.reshape(n, c, h, w)

    # ------------------------- two-pass tiled pipeline ------------------------
    if tile_budget_bytes is None:
        tile_budget_bytes = min(8 << 20, vmem_limit_bytes // 8)
    thw, n_t = _spatial_tiling(hw, c8, elt, tile_budget_bytes)

    # pass 1: global average pool (tiled, masked reduction) + down/ReLU/up/sigmoid
    scale = pl.pallas_call(
        functools.partial(_se_scale_kernel, inv_hw=inv_hw, c=c, hw=hw, thw=thw),
        out_shape=jax.ShapeDtypeStruct((n, c, 1), jnp.float32),
        grid=(n, n_t),
        in_specs=[
            pl.BlockSpec((1, c, thw), lambda b, t: (b, 0, t)),
            pl.BlockSpec((i8, c8), lambda b, t: (0, 0)),
            pl.BlockSpec((i8, 1), lambda b, t: (0, 0)),
            pl.BlockSpec((c8, i8), lambda b, t: (0, 0)),
            pl.BlockSpec((c8, 1), lambda b, t: (0, 0)),
        ],
        out_specs=pl.BlockSpec((1, c, 1), lambda b, t: (b, 0, 0)),
        scratch_shapes=[pltpu.VMEM((c8, 8), jnp.float32),
                        pltpu.VMEM((c8, 1), jnp.float32)],
        compiler_params=pltpu.CompilerParams(
            dimension_semantics=("parallel", "arbitrary"),
            vmem_limit_bytes=int(vmem_limit_bytes)),
    )(x, wd, bd, wu, bu)

    # pass 2: lane-dense, spatially tiled, fully parallel broadcast multiply
    # (N x n_t parallel grid points -> keeps both v7x TensorCores busy).
    y = pl.pallas_call(
        _se_apply_kernel,
        out_shape=jax.ShapeDtypeStruct((n, c, hw), x.dtype),
        grid=(n, n_t),
        in_specs=[
            pl.BlockSpec((1, c, thw), lambda b, t: (b, 0, t)),
            pl.BlockSpec((1, c, 1), lambda b, t: (b, 0, 0)),
        ],
        out_specs=pl.BlockSpec((1, c, thw), lambda b, t: (b, 0, t)),
        compiler_params=pltpu.CompilerParams(
            dimension_semantics=("parallel", "parallel"),
            vmem_limit_bytes=int(vmem_limit_bytes)),
    )(x, scale)
    return y.reshape(n, c, h, w)


# ------------------------------- module wrapper --------------------------------
class SEBlockPallas:
    """Pallas-TPU SEBlock: y = x * sigmoid(up(relu(down(avgpool(x)))))."""

    def __init__(self, key, input_channels, internal_neurons):
        k1, k2, k3, k4 = jax.random.split(key, 4)
        # nn.Conv2d(C, I, 1) weight is (I, C, 1, 1); keep the squeezed (I, C) form.
        self.down_w = jax.random.normal(
            k1, (internal_neurons, input_channels), dtype=jnp.float32) * 0.3
        self.down_b = jax.random.normal(
            k2, (internal_neurons,), dtype=jnp.float32) * 0.1
        self.up_w = jax.random.normal(
            k3, (input_channels, internal_neurons), dtype=jnp.float32) * 0.3
        self.up_b = jax.random.normal(
            k4, (input_channels,), dtype=jnp.float32) * 0.1
        self.input_channels = input_channels

    def __call__(self, x_nchw, **kw):
        return se_block_forward(x_nchw, self.down_w, self.down_b,
                                self.up_w, self.up_b, **kw)


# ----------------------------- plain-JAX reference -----------------------------
def reference_se_block(x_nchw, blk):
    pooled = jnp.mean(x_nchw, axis=(2, 3))                              # (N, C)
    h = jnp.maximum(pooled @ blk.down_w.T + blk.down_b, 0.0)
    s = jax.nn.sigmoid(h @ blk.up_w.T + blk.up_b)                       # (N, C)
    return x_nchw * s[:, :, None, None]


# ------------------------------------ main --------------------------------------
if __name__ == "__main__":
    key = jax.random.PRNGKey(0)
    k_x, k_p, k_p2 = jax.random.split(key, 3)

    # Case 1: fused single-pass path (slab fits VMEM -> x read from HBM once).
    x = jax.random.normal(k_x, (2, 4, 16, 16), dtype=jnp.float32)
    blk = SEBlockPallas(k_p, input_channels=4, internal_neurons=2)
    y = jax.block_until_ready(blk(x))
    y_ref = reference_se_block(x, blk)
    assert y.shape == x.shape, y.shape
    err = float(jnp.max(jnp.abs(y - y_ref)))
    assert jnp.allclose(y, y_ref, rtol=1e-4, atol=1e-4), err

    # Case 2: two-pass tiled path with a ragged spatial tail (hw=100 -> one
    # 128-lane tile, in-kernel lane mask) and C not a multiple of 8.
    x2 = jax.random.normal(k_x, (2, 4, 10, 10), dtype=jnp.float32)
    y2 = jax.block_until_ready(blk(x2, force_two_pass=True))
    y2_ref = reference_se_block(x2, blk)
    err2 = float(jnp.max(jnp.abs(y2 - y2_ref)))
    assert jnp.allclose(y2, y2_ref, rtol=1e-4, atol=1e-4), err2

    # Case 3: two-pass path with several spatial tiles + ragged edge tile
    # (tiny tile budget forces n_t > 1, exercising the tiled reduction).
    blk3 = SEBlockPallas(k_p2, input_channels=16, internal_neurons=4)
    x3 = jax.random.normal(k_x, (1, 16, 24, 24), dtype=jnp.float32)
    y3 = jax.block_until_ready(blk3(x3, force_two_pass=True,
                                    tile_budget_bytes=16 * 1024))
    y3_ref = reference_se_block(x3, blk3)
    err3 = float(jnp.max(jnp.abs(y3 - y3_ref)))
    assert jnp.allclose(y3, y3_ref, rtol=1e-4, atol=1e-4), err3

    print("KERNEL_OK")
</pallas_src>

<mosaic_0001>
module attributes {stable_mosaic.version = 11 : i64} {
  func.func @_se_fused_kernel(%arg0: i32, %arg1: memref<1x4x256xf32, #tpu.memory_space<vmem>>, %arg2: memref<8x8xf32, #tpu.memory_space<vmem>>, %arg3: memref<8x1xf32, #tpu.memory_space<vmem>>, %arg4: memref<8x8xf32, #tpu.memory_space<vmem>>, %arg5: memref<8x1xf32, #tpu.memory_space<vmem>>, %arg6: memref<1x4x256xf32, #tpu.memory_space<vmem>>, %arg7: memref<8x8xf32, #tpu.memory_space<vmem>>, %arg8: memref<8x1xf32, #tpu.memory_space<vmem>>) attributes {dimension_semantics = [#tpu.dimension_semantics<parallel>], iteration_bounds = array<i64: 2>, scalar_prefetch = 0 : i64, scratch_operands = 2 : i64, tpu.core_type = #tpu.core_type<tc>, window_params = [{transform_indices = @transform_0, window_bounds = array<i64: 1, 4, 256>}, {pipeline_mode = #tpu.pipeline_mode<synchronous>, transform_indices = @transform_1, window_bounds = array<i64: 8, 8>}, {pipeline_mode = #tpu.pipeline_mode<synchronous>, transform_indices = @transform_2, window_bounds = array<i64: 8, 1>}, {pipeline_mode = #tpu.pipeline_mode<synchronous>, transform_indices = @transform_3, window_bounds = array<i64: 8, 8>}, {pipeline_mode = #tpu.pipeline_mode<synchronous>, transform_indices = @transform_4, window_bounds = array<i64: 8, 1>}, {transform_indices = @transform_5, window_bounds = array<i64: 1, 4, 256>}]} {
    %c0 = arith.constant 0 : index
    %c0_0 = arith.constant 0 : index
    %c0_1 = arith.constant 0 : index
    %0 = vector.load %arg1[%c0, %c0_0, %c0_1] : memref<1x4x256xf32, #tpu.memory_space<vmem>>, vector<1x4x256xf32>
    %1 = vector.shape_cast %0 : vector<1x4x256xf32> to vector<4x256xf32>
    %cst = arith.constant dense<0.000000e+00> : vector<4xf32>
    %2 = vector.multi_reduction <add>, %1, %cst [1] : vector<4x256xf32> to vector<4xf32>
    %3 = vector.shape_cast %2 : vector<4xf32> to vector<4x1xf32>
    %cst_2 = arith.constant 3.906250e-03 : f32
    %4 = vector.broadcast %cst_2 : f32 to vector<4x1xf32>
    %5 = arith.mulf %3, %4 : vector<4x1xf32>
    %cst_3 = arith.constant 0.000000e+00 : f32
    %6 = vector.broadcast %cst_3 : f32 to vector<8x8xf32>
    %c0_4 = arith.constant 0 : index
    %c0_5 = arith.constant 0 : index
    %7 = vector.load %arg7[%c0_4, %c0_5] : memref<8x8xf32, #tpu.memory_space<vmem>>, vector<8x8xf32>
    tpu.vector_store %arg7[%c0_4, %c0_5], %6 {strides = array<i32>} : memref<8x8xf32, #tpu.memory_space<vmem>>, vector<8x8xf32>,
    %8 = vector.shape_cast %5 : vector<4x1xf32> to vector<4x1xf32>
    %9 = vector.broadcast %8 : vector<4x1xf32> to vector<4x8xf32>
    %c0_6 = arith.constant 0 : index
    %c0_7 = arith.constant 0 : index
    %10 = vector.load %arg7[%c0_6, %c0_7] : memref<8x8xf32, #tpu.memory_space<vmem>>, vector<4x8xf32>
    tpu.vector_store %arg7[%c0_6, %c0_7], %9 {strides = array<i32>} : memref<8x8xf32, #tpu.memory_space<vmem>>, vector<4x8xf32>,
    %c0_8 = arith.constant 0 : index
    %c0_9 = arith.constant 0 : index
    %11 = vector.load %arg7[%c0_8, %c0_9] : memref<8x8xf32, #tpu.memory_space<vmem>>, vector<8x8xf32>
    %c0_10 = arith.constant 0 : index
    %c0_11 = arith.constant 0 : index
    %12 = vector.load %arg2[%c0_10, %c0_11] : memref<8x8xf32, #tpu.memory_space<vmem>>, vector<8x8xf32>
    %c0_12 = arith.constant 0 : index
    %c0_13 = arith.constant 0 : index
    %13 = vector.load %arg3[%c0_12, %c0_13] : memref<8x1xf32, #tpu.memory_space<vmem>>, vector<8x1xf32>
    %c0_14 = arith.constant 0 : index
    %c0_15 = arith.constant 0 : index
    %14 = vector.load %arg4[%c0_14, %c0_15] : memref<8x8xf32, #tpu.memory_space<vmem>>, vector<8x8xf32>
    %c0_16 = arith.constant 0 : index
    %c0_17 = arith.constant 0 : index
    %15 = vector.load %arg5[%c0_16, %c0_17] : memref<8x1xf32, #tpu.memory_space<vmem>>, vector<8x1xf32>
    %cst_18 = arith.constant dense<0.000000e+00> : vector<8x8xf32>
    %16 = tpu.matmul %12, %11, %cst_18 {dimension_numbers = #tpu.dot_dimension_numbers<[1], [0], [0], [1], [0, 0, 1, 1], [], []>} : vector<8x8xf32>, vector<8x8xf32>, vector<8x8xf32> -> vector<8x8xf32>
    %17 = vector.broadcast %13 : vector<8x1xf32> to vector<8x8xf32>
    %18 = arith.addf %16, %17 : vector<8x8xf32>
    %cst_19 = arith.constant 0.000000e+00 : f32
    %19 = vector.broadcast %cst_19 : f32 to vector<8x8xf32>
    %20 = arith.maximumf %18, %19 : vector<8x8xf32>
    %cst_20 = arith.constant dense<0.000000e+00> : vector<8x8xf32>
    %21 = tpu.matmul %14, %20, %cst_20 {dimension_numbers = #tpu.dot_dimension_numbers<[1], [0], [0], [1], [0, 0, 1, 1], [], []>} : vector<8x8xf32>, vector<8x8xf32>, vector<8x8xf32> -> vector<8x8xf32>
    %22 = vector.broadcast %15 : vector<8x1xf32> to vector<8x8xf32>
    %23 = arith.addf %21, %22 : vector<8x8xf32>
    %24 = vector.extract_strided_slice %23 {offsets = [0, 0], sizes = [8, 1], strides = [1, 1]} : vector<8x8xf32> to vector<8x1xf32>
    %25 = math.absf %24 : vector<8x1xf32>
    %cst_21 = arith.constant 0.000000e+00 : f32
    %26 = vector.broadcast %cst_21 : f32 to vector<8x1xf32>
    %27 = arith.subf %26, %25 : vector<8x1xf32>
    %28 = math.exp %27 : vector<8x1xf32>
    %cst_22 = arith.constant 0.000000e+00 : f32
    %29 = vector.broadcast %cst_22 : f32 to vector<8x1xf32>
    %30 = arith.cmpf oge, %24, %29 : vector<8x1xf32>
    %cst_23 = arith.constant 1.000000e+00 : f32
    %31 = vector.broadcast %cst_23 : f32 to vector<8x1xf32>
    %32 = arith.addf %31, %28 : vector<8x1xf32>
    %cst_24 = arith.constant 1.000000e+00 : f32
    %33 = vector.broadcast %cst_24 : f32 to vector<8x1xf32>
    %34 = arith.divf %33, %32 : vector<8x1xf32>
    %cst_25 = arith.constant 1.000000e+00 : f32
    %35 = vector.broadcast %cst_25 : f32 to vector<8x1xf32>
    %36 = arith.addf %35, %28 : vector<8x1xf32>
    %37 = arith.divf %28, %36 : vector<8x1xf32>
    %38 = arith.select %30, %34, %37 : vector<8x1xi1>, vector<8x1xf32>
    %c0_26 = arith.constant 0 : index
    %c0_27 = arith.constant 0 : index
    %39 = vector.load %arg8[%c0_26, %c0_27] : memref<8x1xf32, #tpu.memory_space<vmem>>, vector<8x1xf32>
    tpu.vector_store %arg8[%c0_26, %c0_27], %38 {strides = array<i32>} : memref<8x1xf32, #tpu.memory_space<vmem>>, vector<8x1xf32>,
    %c0_28 = arith.constant 0 : index
    %c0_29 = arith.constant 0 : index
    %40 = vector.load %arg8[%c0_28, %c0_29] : memref<8x1xf32, #tpu.memory_space<vmem>>, vector<4x1xf32>
    %41 = vector.broadcast %40 : vector<4x1xf32> to vector<4x256xf32>
    %42 = arith.mulf %1, %41 : vector<4x256xf32>
    %c0_30 = arith.constant 0 : index
    %c0_31 = arith.constant 0 : index
    %c0_32 = arith.constant 0 : index
    %43 = vector.load %arg6[%c0_30, %c0_31, %c0_32] : memref<1x4x256xf32, #tpu.memory_space<vmem>>, vector<1x4x256xf32>
    %44 = vector.shape_cast %43 : vector<1x4x256xf32> to vector<4x256xf32>
    %45 = vector.shape_cast %42 : vector<4x256xf32> to vector<1x4x256xf32>
    tpu.vector_store %arg6[%c0_30, %c0_31, %c0_32], %45 {strides = array<i32>} : memref<1x4x256xf32, #tpu.memory_space<vmem>>, vector<1x4x256xf32>,
    return
  }
  func.func @transform_0(%arg0: i32) -> (i32, i32, i32) {
    %c0_i32 = arith.constant 0 : i32
    %c0_i32_0 = arith.constant 0 : i32
    %c0_i32_1 = arith.constant 0 : i32
    return %arg0, %c0_i32, %c0_i32_0 : i32, i32, i32
  }
  func.func @transform_1(%arg0: i32) -> (i32, i32) {
    %c0_i32 = arith.constant 0 : i32
    %c0_i32_0 = arith.constant 0 : i32
    %c0_i32_1 = arith.constant 0 : i32
    return %c0_i32, %c0_i32_0 : i32, i32
  }
  func.func @transform_2(%arg0: i32) -> (i32, i32) {
    %c0_i32 = arith.constant 0 : i32
    %c0_i32_0 = arith.constant 0 : i32
    %c0_i32_1 = arith.constant 0 : i32
    return %c0_i32, %c0_i32_0 : i32, i32
  }
  func.func @transform_3(%arg0: i32) -> (i32, i32) {
    %c0_i32 = arith.constant 0 : i32
    %c0_i32_0 = arith.constant 0 : i32
    %c0_i32_1 = arith.constant 0 : i32
    return %c0_i32, %c0_i32_0 : i32, i32
  }
  func.func @transform_4(%arg0: i32) -> (i32, i32) {
    %c0_i32 = arith.constant 0 : i32
    %c0_i32_0 = arith.constant 0 : i32
    %c0_i32_1 = arith.constant 0 : i32
    return %c0_i32, %c0_i32_0 : i32, i32
  }
  func.func @transform_5(%arg0: i32) -> (i32, i32, i32) {
    %c0_i32 = arith.constant 0 : i32
    %c0_i32_0 = arith.constant 0 : i32
    %c0_i32_1 = arith.constant 0 : i32
    return %arg0, %c0_i32, %c0_i32_0 : i32, i32, i32
  }
}

</mosaic_0001>

<bundles_post_ra>
// kernel: se_block_forward.1
= control target key start
LH: loop header
LB: loop body
LE: loop exit
PB: predicated region body
PF: predicated region fallthrough
CT: control target
= control target key end

     0   :  { %s574_s18 = smov 0   ;;  %s613_s0 = inlined_call_operand.vmem [shape: f32[2,4,256], index: 0, kind: input, shape index: {}]   ;;  %s614_s1 = inlined_call_operand.vmem [shape: f32[8,8], index: 1, kind: input, shape index: {}]   ;;  %s615_s2 = inlined_call_operand.vmem [shape: f32[8,1], index: 2, kind: input, shape index: {}]   ;;  %s616_s3 = inlined_call_operand.vmem [shape: f32[8,8], index: 3, kind: input, shape index: {}]   ;;  %s617_s4 = inlined_call_operand.vmem [shape: f32[8,1], index: 4, kind: input, shape index: {}]   ;;  %s618_s5 = inlined_call_operand.vmem [shape: f32[2,4,256], index: 5, kind: output, shape index: {}]  }
   0x1 LB: > { %s484_s19 = sadd.s32 4294967295, %s538_s18   ;;  %p488_p0 = scmp.ge.s32.totalorder %s538_s18, 1  ;;  %s538_s18 = sphi %s574_s18, %s15_s18  }
   0x2   : > { %p187_p1 = scmp.lt.s32.totalorder %s538_s18, 3 }
   0x4   : > { %p188_p2 = pnand %p488_p0, %p187_p1 }
   0x5   : > { %p215_p3 = scmp.lt.s32.totalorder (!%p188_p2), %s484_s19, 1  ;;  %vm236_vm0 = vcmask (!%p188_p2), 64512   ;;  %v540_v0 = vmov (!%p188_p2), 0.0   ;;  %vm229_vm1 = vcmask (!%p188_p2), 1043456   ;;  %vm541_vm2 = vmmov (!%p188_p2), 0   ;;  %v242_v6 = vld [vmem:[%s615_s2] sm:$0xff] (!%p188_p2) }
   0x6   : > { %191 = sbr.rel (%p188_p2) target bundleno = 780 (0x30c), region = 40  ;;  %237 = vst.msk [vmem:[#allocation2] sm:$0xff] (!%p188_p2), %vm236_vm0, %v540_v0  ;;  %503 = vmatprep.subr.mxu0 (!%p188_p2), %v540_v0  ;;  %508 = vmatprep.subr.mxu1 (!%p188_p2), %v540_v0  ;;  %v542_v7 = vmov (!%p188_p2), 0   ;;  %vm238_vm3 = vcmask (!%p188_p2), 60416   ;;  %v241_v10 = vld [vmem:[%s614_s1] sm:$0xff] (!%p188_p2)  ;;  %vm412_vm4 = vcmask (!%p188_p2), 7168   ;;  %v422_v34 = vlaneseq (!%p188_p2) }
   0x7   : > { %505 = vmatprep.mubr.msk.f32.mxu0 (!%p188_p2), %vm541_vm2, %v540_v0  ;;  %510 = vmatprep.mubr.msk.f32.mxu1 (!%p188_p2), %vm541_vm2, %v540_v0  ;;  %v244_v12 = vld [vmem:[%s617_s4] sm:$0xff] (!%p188_p2)  ;;  %v543_v32 = vmov (!%p188_p2), 839922192  }
   0x8   : > { %525 = vset.pattern.permute.xlu0 (!%p188_p2), %v542_v7  ;;  %526 = vset.pattern.permute.xlu1 (!%p188_p2), %v542_v7  ;;  %v243_v18 = vld [vmem:[%s616_s3] sm:$0xff] (!%p188_p2)  ;;  %v420_v33 = vunpack.c.l.s4 (!%p188_p2), %v543_v32  ;;  %v423_v36 = vshrl.u32 (!%p188_p2), %v422_v34, 7 }
   0x9   : > { %326 = vperm.xlu1 (!%p188_p2), %526, %v244_v12  }
   0xa   : > { %v421_v35 = vunpack.c.0.s8 (!%p188_p2), %v420_v33 }
   0xc   : > { %v424_v37 = vsub.s32 (!%p188_p2), %v421_v35, %v423_v36 }
   0xd   : > { %s620_s19 = smov (!%p215_p3, %s484_s19), 1 }
   0xe   : > { %s497_s20 = sshll.u32 %s620_s19, 3 }
   0xf   : > { %s219_s23 = scalar_lea.vmem %s613_s0, %s497_s20  ;;  %s224_s9 = scalar_lea.vmem %s618_s5, %s497_s20 }
  0x10   : > { %v225_v1 = vld [vmem:[%s219_s23] sm:$0xff] }
  0x11   : > { %v227_v2 = vcombine.high %v225_v1, %v225_v1  ;;  %v230_v3 = vsel %vm229_vm1, %v225_v1, 0.0 }
  0x13   : > { %v231_v4 = vsel %vm229_vm1, %v227_v2, 0.0 }
  0x14   : > { %v232_v5 = vadd.f32 %v231_v4, %v230_v3 }
  0x16   : > { %233 = vadd.xlane.f32.xlu0 %v232_v5 }
  0x2c   : > { %247 = vperm.xlu0 %525, %v242_v6  }
  0x88   : > { %v327_v19 = vpop.permute.xlu1 %326 }
  0xa3   : > { %v234_v8 = vpop.xlane.xlu0 %233 }
  0xa4   : > { %v235_v9 = vmul.f32 0.00390625, %v234_v8 }
  0xa6   : > { %239 = vst.msk [vmem:[#allocation2] sm:$0xf] %vm238_vm3, %v235_v9 }
  0xab   : > { %v248_v13 = vpop.permute.xlu0 %247 }
  0xad   : > { %v240_v11 = vld [vmem:[#allocation2] sm:$0xff] }
  0xae   : > { %504 = vmatpush3.msra.mxu0 %v240_v11 }
  0xaf   : > { %506 = vmatmul.mubr.msk.f32.vlgmr.msra.gmra.mrb[0].mxu0 %vm236_vm0, %v241_v10 }
 0x182   : > { %v319_v14 = vpop.f32.mrb[0].mxu0 }
 0x183   : > { %v320_v15 = vadd.f32 %v319_v14, %v248_v13  ;;  %v507_v16 = vpop.f32.mrb[1].mxu0 }
 0x185   : > { %v323_v17 = vmax.f32 %v320_v15, 0.0 }
 0x187   : > { %509 = vmatpush3.msra.mxu1 %v323_v17 }
 0x188   : > { %511 = vmatmul.mubr.msk.f32.vlgmr.msra.gmra.mrb[0].mxu1 %vm236_vm0, %v243_v18 }
 0x25b   : > { %v398_v20 = vpop.f32.mrb[0].mxu1 }
 0x25c   : > { %v399_v21 = vadd.f32 %v398_v20, %v327_v19  ;;  %v512_v22 = vpop.f32.mrb[1].mxu1 }
 0x25e   : > { %v402_v23 = vand.u32 2147483647, %v399_v21  ;;  %vm406_vm5 = vcmp.ge.f32.partialorder %v399_v21, 0.0 }
 0x260   : > { %v403_v24 = vsub.f32 0.0, %v402_v23 }
 0x262   : > { %v404_v25 = vmul.f32 1.442695, %v403_v24 }
 0x264   : > { %528 = vpow2.f32 %v404_v25 }
 0x26e   : > { %v529_v26 = vpop.eup %528 }
 0x26f   : > { %v407_v27 = vadd.f32 1.0, %v529_v26 }
 0x271   : > { %530 = vrcp.f32 %v407_v27 }
 0x27b   : > { %v531_v28 = vpop.eup %530 }
 0x27c   : > { %v410_v29 = vmul.f32 %v531_v28, %v529_v26 }
 0x27e   : > { %v411_v30 = vsel %vm406_vm5, %v531_v28, %v410_v29 }
 0x27f   : > { %413 = vst.msk [vmem:[#allocation3] sm:$0xff] %vm412_vm4, %v411_v30 }
 0x286   : > { %v414_v31 = vld [vmem:[#allocation3] sm:$0xf] }
 0x287   : > { %417 = vperm.xlu1 %526, %v414_v31  }
 0x306   : > { %v418_v38 = vpop.permute.xlu1 %417 }
 0x307   : > { %v425_v39 = vrot.slane %v418_v38, %v424_v37 }
 0x309   : > { %v427_v40 = vmul.f32 %v425_v39, %v225_v1 }
 0x30b   : > { %428 = vst [vmem:[%s224_s9] sm:$0xff] %v427_v40 }
 0x30c PF: > { %s15_s18 = sadd.s32 1, %s538_s18  }
 0x30d   : > { %p12_p4 = scmp.ge.s32.totalorder %s15_s18, 4  }
 0x30f   :  { %14 = sbr.rel (!%p12_p4) target bundleno = 1 (0x1), region = 70 }

</bundles_post_ra>
